<compile_context>
chip_gen: v5e
topology: v5e:2x2
jax: 0.10.0
libtpu: 0.0.40
codegen_flags: <defaults>
</compile_context>

<pallas_src>
import functools

import jax
import jax.numpy as jnp
from jax.experimental import pallas as pl
from jax.experimental.pallas import tpu as pltpu

_LANE = 128          # TPU lane width
_SUB = 16            # bf16 packs 2 rows/sublane -> round row tiles to 16
_TM_MAX = 16 * 1024  # upper bound on rows per grid step


def _round_up(x, m):
    return ((x + m - 1) // m) * m


def _vmem_limit_bytes():
    """Generation-aware VMEM limit (v5e/v6e: 128 MiB, v7x: 64 MiB per TC)."""
    cap = None
    try:
        cap = getattr(pltpu.get_tpu_info(), "vmem_capacity_bytes", None)
    except Exception:
        cap = None
    if not cap:
        cap = 64 * 1024 * 1024                 # conservative fallback (v7x)
    return int(min((cap * 3) // 4, 96 * 1024 * 1024))


def _wrapper_kernel(x_ref, w_ref, b_ref, o_ref):
    # x.float() ∘ Linear, fused.  Single-pass bf16 MXU matmul, f32 accumulate.
    xb = x_ref[...].astype(jnp.bfloat16)
    y = jnp.dot(xb, w_ref[...], preferred_element_type=jnp.float32)
    o_ref[...] = y + b_ref[...]                # bias f32; output f32


def prepare_inner_linear(weight_t, bias):
    """One-time packing of inner = Linear(H, H) params (NOT per call).

    weight_t: (H, H) f32, already transposed so y = x @ weight_t + bias.
    Returns (w_packed bf16 (Hp,Hp), b_packed f32 (1,Hp), P, Hp): P rows of
    width H are packed into one 128-lane row when H < 128 and 128 % H == 0.
    """
    H = weight_t.shape[0]
    if H < _LANE and _LANE % H == 0:
        P = _LANE // H
        Hp = _LANE
        w_k = jnp.kron(jnp.eye(P, dtype=weight_t.dtype), weight_t)  # block-diag
        b_k = jnp.tile(bias, P).reshape(1, Hp)
    else:
        # TODO(synk): for large H, add K/N grid axes + f32 VMEM accumulator
        #             instead of keeping the full (Hp, Hp) weight resident.
        P = 1
        Hp = _round_up(H, _LANE)
        w_k = jnp.pad(weight_t, ((0, Hp - H), (0, Hp - H)))
        b_k = jnp.pad(bias, (0, Hp - H)).reshape(1, Hp)
    return w_k.astype(jnp.bfloat16), b_k.astype(jnp.float32), P, Hp


@functools.partial(jax.jit, static_argnums=(3, 4))
def model_wrapper_forward(x, w_packed, b_packed, P, Hp):
    """inner(x.float()) with inner = Linear(H, H).  x: (B, S, H) -> f32 (B, S, H)."""
    B, S, H = x.shape
    M = B * S
    x2d = x.reshape(M, H)

    # ---- lane-dense view of x (pure reshape when M % P == 0; no HBM copy) ----
    if P > 1:
        M1 = _round_up(M, P)
        if M1 != M:                             # rare ragged case only
            x2d = jnp.pad(x2d, ((0, M1 - M), (0, 0)))
        xp = x2d.reshape(M1 // P, Hp)
    else:
        xp = x2d if Hp == H else jnp.pad(x2d, ((0, 0), (0, Hp - H)))
    Mp = xp.shape[0]

    # ---- row tile: fill VMEM, keep >=4 grid steps when there is enough work --
    x_bytes = jnp.dtype(x.dtype).itemsize
    vmem_limit = _vmem_limit_bytes()
    budget = (vmem_limit * 2) // 3              # headroom: weight/bias/scratch
    per_row = Hp * (x_bytes + 4) * 2            # double-buffered input + output
    tm_cap = max(_SUB, min(_TM_MAX, (budget // per_row) // _SUB * _SUB))
    TM = min(tm_cap, max(_SUB, _round_up(pl.cdiv(Mp, 4), _SUB)))
    TM = min(TM, Mp)                            # tiny problem: block == array
    grid = pl.cdiv(Mp, TM)                      # ragged tail masked by Pallas

    cost = pl.CostEstimate(
        flops=2 * Mp * Hp * Hp,
        transcendentals=0,
        bytes_accessed=Mp * Hp * (x_bytes + 4) + Hp * Hp * 2 + Hp * 4)

    out = pl.pallas_call(
        _wrapper_kernel,
        out_shape=jax.ShapeDtypeStruct((Mp, Hp), jnp.float32),
        grid_spec=pl.GridSpec(
            grid=(grid,),
            in_specs=[
                pl.BlockSpec((TM, Hp), lambda i: (i, 0)),   # x rows: streamed
                pl.BlockSpec((Hp, Hp), lambda i: (0, 0)),   # weight: resident
                pl.BlockSpec((1, Hp), lambda i: (0, 0)),    # bias:   resident
            ],
            out_specs=pl.BlockSpec((TM, Hp), lambda i: (i, 0)),
        ),
        compiler_params=pltpu.CompilerParams(
            dimension_semantics=("parallel",),  # shard rows across TCs (v7x)
            vmem_limit_bytes=vmem_limit),
        cost_estimate=cost,
    )(xp, w_packed, b_packed)

    # ---- unpack (single reshape/slice) ----
    if P > 1:
        out = out.reshape(Mp * P, H)
        if Mp * P != M:
            out = out[:M]
    elif Hp != H:
        out = out[:, :H]
    return out.reshape(B, S, H)


if __name__ == "__main__":
    # Small shapes implied by the wrapper: batch=2, seq=8, hidden=32.
    B, S, H = 2, 8, 32
    key = jax.random.PRNGKey(0)
    kx, kw, kb, kx2 = jax.random.split(key, 4)

    # Input in bf16 so the in-kernel .float() cast is meaningful.
    x = jax.random.normal(kx, (B, S, H), dtype=jnp.bfloat16)

    # Deterministic params for the (synthetic) inner = Linear(H, H),
    # stored pre-transposed: weight_t = W^T so the kernel does x @ W^T + b.
    weight_t = jax.random.normal(kw, (H, H), dtype=jnp.float32) * 0.02
    bias = jax.random.normal(kb, (H,), dtype=jnp.float32) * 0.01

    # One-time parameter packing (outside the per-call path).
    w_packed, b_packed, P, Hp = prepare_inner_linear(weight_t, bias)

    out = model_wrapper_forward(x, w_packed, b_packed, P, Hp)
    out = jax.block_until_ready(out)
    ref = (x.astype(jnp.float32).reshape(B * S, H) @ weight_t + bias).reshape(B, S, H)
    assert out.dtype == jnp.float32
    assert jnp.allclose(out, ref, atol=1e-2, rtol=1e-2), \
        float(jnp.max(jnp.abs(out - ref)))

    # Second check: larger M exercises the multi-step streamed grid.
    B2, S2 = 4, 64
    x2 = jax.random.normal(kx2, (B2, S2, H), dtype=jnp.bfloat16)
    out2 = jax.block_until_ready(model_wrapper_forward(x2, w_packed, b_packed, P, Hp))
    ref2 = (x2.astype(jnp.float32).reshape(B2 * S2, H) @ weight_t + bias).reshape(B2, S2, H)
    assert jnp.allclose(out2, ref2, atol=1e-2, rtol=1e-2), \
        float(jnp.max(jnp.abs(out2 - ref2)))

    print("KERNEL_OK")
</pallas_src>

<mosaic_0001>
module attributes {stable_mosaic.version = 11 : i64} {
  func.func @_wrapper_kernel(%arg0: i32, %arg1: memref<4x128xbf16, #tpu.memory_space<vmem>>, %arg2: memref<128x128xbf16, #tpu.memory_space<vmem>>, %arg3: memref<1x128xf32, #tpu.memory_space<vmem>>, %arg4: memref<4x128xf32, #tpu.memory_space<vmem>>) attributes {dimension_semantics = [#tpu.dimension_semantics<parallel>], iteration_bounds = array<i64: 1>, scalar_prefetch = 0 : i64, scratch_operands = 0 : i64, tpu.core_type = #tpu.core_type<tc>, window_params = [{transform_indices = @transform_0, window_bounds = array<i64: 4, 128>}, {pipeline_mode = #tpu.pipeline_mode<synchronous>, transform_indices = @transform_1, window_bounds = array<i64: 128, 128>}, {pipeline_mode = #tpu.pipeline_mode<synchronous>, transform_indices = @transform_2, window_bounds = array<i64: 1, 128>}, {transform_indices = @transform_3, window_bounds = array<i64: 4, 128>}]} {
    %c0 = arith.constant 0 : index
    %c0_0 = arith.constant 0 : index
    %0 = vector.load %arg1[%c0, %c0_0] : memref<4x128xbf16, #tpu.memory_space<vmem>>, vector<4x128xbf16>
    %c0_1 = arith.constant 0 : index
    %c0_2 = arith.constant 0 : index
    %1 = vector.load %arg2[%c0_1, %c0_2] : memref<128x128xbf16, #tpu.memory_space<vmem>>, vector<128x128xbf16>
    %cst = arith.constant dense<0.000000e+00> : vector<4x128xf32>
    %2 = tpu.matmul %0, %1, %cst {dimension_numbers = #tpu.dot_dimension_numbers<[1], [0], [0], [1], [0, 0, 1, 1], [], []>} : vector<4x128xbf16>, vector<128x128xbf16>, vector<4x128xf32> -> vector<4x128xf32>
    %c0_3 = arith.constant 0 : index
    %c0_4 = arith.constant 0 : index
    %3 = vector.load %arg3[%c0_3, %c0_4] : memref<1x128xf32, #tpu.memory_space<vmem>>, vector<1x128xf32>
    %4 = vector.broadcast %3 : vector<1x128xf32> to vector<4x128xf32>
    %5 = arith.addf %2, %4 : vector<4x128xf32>
    %c0_5 = arith.constant 0 : index
    %c0_6 = arith.constant 0 : index
    %6 = vector.load %arg4[%c0_5, %c0_6] : memref<4x128xf32, #tpu.memory_space<vmem>>, vector<4x128xf32>
    tpu.vector_store %arg4[%c0_5, %c0_6], %5 {strides = array<i32>} : memref<4x128xf32, #tpu.memory_space<vmem>>, vector<4x128xf32>,
    return
  }
  func.func @transform_0(%arg0: i32) -> (i32, i32) {
    %c0_i32 = arith.constant 0 : i32
    %c0_i32_0 = arith.constant 0 : i32
    return %arg0, %c0_i32 : i32, i32
  }
  func.func @transform_1(%arg0: i32) -> (i32, i32) {
    %c0_i32 = arith.constant 0 : i32
    %c0_i32_0 = arith.constant 0 : i32
    %c0_i32_1 = arith.constant 0 : i32
    return %c0_i32, %c0_i32_0 : i32, i32
  }
  func.func @transform_2(%arg0: i32) -> (i32, i32) {
    %c0_i32 = arith.constant 0 : i32
    %c0_i32_0 = arith.constant 0 : i32
    %c0_i32_1 = arith.constant 0 : i32
    return %c0_i32, %c0_i32_0 : i32, i32
  }
  func.func @transform_3(%arg0: i32) -> (i32, i32) {
    %c0_i32 = arith.constant 0 : i32
    %c0_i32_0 = arith.constant 0 : i32
    return %arg0, %c0_i32 : i32, i32
  }
}

</mosaic_0001>

<bundles_post_ra>
// kernel: model_wrapper_forward.1
= control target key start
LH: loop header
LB: loop body
LE: loop exit
PB: predicated region body
PF: predicated region fallthrough
CT: control target
= control target key end

     0   :  { %8 = vsyncpa [#allocation3], 0  ;;  %s188_s15 = smov [#allocation2]   ;;  %s189_s17 = smov 64   ;;  %s223_s0 = inlined_call_operand.vmem [shape: bf16[4,128], index: 0, kind: input, shape index: {}]   ;;  %s224_s1 = inlined_call_operand.hbm [shape: bf16[128,128], index: 1, kind: input, shape index: {}]   ;;  %s225_s2 = inlined_call_operand.vmem [shape: f32[1,128], index: 2, kind: input, shape index: {}]   ;;  %s226_s3 = inlined_call_operand.vmem [shape: f32[4,128], index: 3, kind: output, shape index: {}]  }
   0x1   :  { %s15_s14 = sshll.u32 %s224_s1, 4  ;;  %s17_s16 = sshll.u32 %s188_s15, 4  ;;  %s16_s14 = int_to_ptr.hbm [resolvable:$true] %s15_s14  ;;  %s18_s16 = int_to_ptr.vmem [resolvable:$true] %s17_s16 }
   0x2   :  { %s190_s18 = smov 4  }
   0x3   :  { %23 = dma.hbm_to_vmem [thread:$0]  %s16_s14, 1024, %s18_s16, [#allocation3], %s189_s17, %s189_s17, %s190_s18  }
   0x4   :  { %186 = dma.done.wait [#allocation3], 1024  }
   0x5   :  { %187 = vsyncadd [#allocation3], 4294966272  ;;  %v157_v0 = vld [vmem:[#allocation2 + $0x38] sm:$0xff]  ;;  %v156_v1 = vld [vmem:[#allocation2 + $0x30] sm:$0xff] }
   0x6   :  { %99 = vmatpush.bf16.msra.mxu0 %v157_v0  ;;  %v155_v2 = vld [vmem:[#allocation2 + $0x28] sm:$0xff]  ;;  %v154_v3 = vld [vmem:[#allocation2 + $0x20] sm:$0xff]  ;;  %v153_v4 = vld [vmem:[#allocation2 + $0x18] sm:$0xff] }
   0x7   :  { %v152_v5 = vld [vmem:[#allocation2 + $0x10] sm:$0xff]  ;;  %v151_v6 = vld [vmem:[#allocation2 + $0x8] sm:$0xff]  ;;  %v150_v7 = vld [vmem:[#allocation2] sm:$0xff] }
   0x8   :  { %v30_v8 = vld [vmem:[%s223_s0] sm:$0x3] }
   0x9   :  { %v161_v9 = vld [vmem:[%s225_s2] ss:$0 sm:$0xff] }
   0xa   :  { %100 = vmatpush.bf16.msra.mxu0 %v156_v1 }
   0xe   :  { %101 = vmatpush.bf16.msra.mxu0 %v155_v2 }
  0x12   :  { %102 = vmatpush.bf16.msra.mxu0 %v154_v3 }
  0x16   :  { %103 = vmatpush.bf16.msra.mxu0 %v153_v4 }
  0x1a   :  { %104 = vmatpush.bf16.msra.mxu0 %v152_v5 }
  0x1e   :  { %105 = vmatpush.bf16.msra.mxu0 %v151_v6 }
  0x22   :  { %106 = vmatpush.bf16.msra.mxu0 %v150_v7 }
  0x25   :  { %107 = vmatmul.bf16.vlgmr.msra.gmra.mxu0 %v30_v8 }
  0xa2   :  { %v108_v10 = vpop.f32.mrf.mxu0 }
  0xa3   :  { %v109_v11 = vadd.f32 %v161_v9, %v108_v10 }
  0xa5   :  { %112 = vst [vmem:[%s226_s3] sm:$0xf] %v109_v11 }
  0xaa   :  { %v110_v12 = vpop.f32.mrf.mxu0 }
  0xab   :  { %117 = vsyncpa [#allocation3], 1 }

</bundles_post_ra>
